<compile_context>
chip_gen: v7x
topology: tpu7x:2x2x1
jax: 0.10.0
libtpu: 0.0.40
codegen_flags: <defaults>
</compile_context>

<pallas_src>
import jax
import jax.numpy as jnp
from jax.experimental import pallas as pl
from jax.experimental.pallas import tpu as pltpu

_LANE = 128


def _ensemble_kernel(x_ref, w_ref, b_ref, out_ref):
    # x_ref:   [TILE_B, C, HW]   activation tile (spatial flattened)
    # w_ref:   [C, NC_PAD]       folded weight (ensemble algebra + 1/HW pool scale)
    # b_ref:   [1, NC_PAD]       folded bias
    # out_ref: [TILE_B, NC_PAD]  lane-dense logits (padded to a multiple of 128)
    pooled = jnp.sum(x_ref[...], axis=-1)               # [TILE_B, C]; 1/HW is in w_ref
    acc = jnp.dot(pooled, w_ref[...], preferred_element_type=jnp.float32)
    out_ref[...] = (acc + b_ref[...]).astype(out_ref.dtype)   # single-epilogue bias add


def ensemble_forward(x_nchw, w_sub, b_sub, w_cls, b_cls, *, tile_b=128):
    """x_nchw: [B, C, H, W]; returns [B, num_classes]."""
    B, C, H, W = x_nchw.shape
    M, _, NC = w_sub.shape
    HW = H * W
    nc_pad = max(_LANE, pl.cdiv(NC, _LANE) * _LANE)

    # ---- algebraic folding (wrapper-side glue) ------------------------------
    # cat_m(GAP(x) @ w_sub[m] + b_sub[m]) @ W_cls + b_cls
    #   = GAP(x) @ (sum_m w_sub[m] @ w_cls[m]) + (b_cls + sum_m b_sub[m] @ w_cls[m])
    w_cls3 = w_cls.reshape(M, NC, NC)
    w_eff = jnp.einsum("mcn,mnk->ck", w_sub, w_cls3) / float(HW)   # fold 1/HW pool scale
    b_eff = b_cls + jnp.einsum("mn,mnk->k", b_sub, w_cls3)

    # Lane-dense padding of the class dimension (zero columns -> identical math).
    w_eff = jnp.pad(w_eff, ((0, 0), (0, nc_pad - NC))).astype(jnp.float32)
    b_eff = jnp.pad(b_eff, (0, nc_pad - NC)).reshape(1, nc_pad).astype(jnp.float32)

    # ---- batch tiling -------------------------------------------------------
    x3 = x_nchw.reshape(B, C, HW).astype(jnp.float32)
    tile_b = min(tile_b, max(8, pl.cdiv(B, 8) * 8))       # don't over-tile tiny batches
    b_padded = pl.cdiv(B, tile_b) * tile_b
    if b_padded != B:
        x3 = jnp.pad(x3, ((0, b_padded - B), (0, 0), (0, 0)))
    grid = (b_padded // tile_b,)

    # VMEM budget: double-buffered x/out tiles + weights, with headroom.
    x_tile_bytes = tile_b * C * HW * 4
    out_tile_bytes = tile_b * nc_pad * 4
    w_bytes = (C + 1) * nc_pad * 4
    vmem_limit = int(min(96 * 1024 * 1024,
                         max(4 * 1024 * 1024,
                             2 * (x_tile_bytes + out_tile_bytes) + 2 * w_bytes + (1 << 20))))

    out_padded = pl.pallas_call(
        _ensemble_kernel,
        out_shape=jax.ShapeDtypeStruct((b_padded, nc_pad), jnp.float32),
        grid=grid,
        in_specs=[
            pl.BlockSpec((tile_b, C, HW), lambda i: (i, 0, 0)),   # batch-tiled activations
            pl.BlockSpec((C, nc_pad), lambda i: (0, 0)),          # folded weight (resident)
            pl.BlockSpec((1, nc_pad), lambda i: (0, 0)),          # folded bias (resident)
        ],
        out_specs=pl.BlockSpec((tile_b, nc_pad), lambda i: (i, 0)),
        compiler_params=pltpu.CompilerParams(
            dimension_semantics=("parallel",),
            vmem_limit_bytes=vmem_limit,
        ),
    )(x3, w_eff, b_eff)

    return out_padded[:B, :NC]


def _reference(x_nchw, w_sub, b_sub, w_cls, b_cls):
    # Pure-JAX reference of the same forward pass (unfolded, for a sanity check).
    pooled = jnp.mean(x_nchw, axis=(2, 3))                       # [B, C]
    outs = [pooled @ w_sub[m] + b_sub[m] for m in range(w_sub.shape[0])]
    concat = jnp.concatenate(outs, axis=1)                       # [B, M*NC]
    return concat @ w_cls + b_cls


if __name__ == "__main__":
    # Small shapes consistent with the module's forward.
    B, C, H, W = 2, 4, 16, 16
    NUM_CLASSES = 3
    NUM_MODELS = 3          # DenseNet121, ResNet50, EfficientNet-B0 stand-ins

    key = jax.random.PRNGKey(0)
    kx, kw1, kb1, kw2, kb2 = jax.random.split(key, 5)

    x = jax.random.normal(kx, (B, C, H, W), dtype=jnp.float32)

    # Synthetic sub-model parameters (GAP + Linear per model).
    w_sub = jax.random.normal(kw1, (NUM_MODELS, C, NUM_CLASSES), dtype=jnp.float32) * 0.1
    b_sub = jax.random.normal(kb1, (NUM_MODELS, NUM_CLASSES), dtype=jnp.float32) * 0.1

    # Ensemble classifier: Linear(NUM_MODELS * NUM_CLASSES -> NUM_CLASSES), math layout
    # (transpose of torch.nn.Linear.weight), so y = x @ W + b.
    w_cls = jax.random.normal(kw2, (NUM_MODELS * NUM_CLASSES, NUM_CLASSES),
                              dtype=jnp.float32) * 0.1
    b_cls = jax.random.normal(kb2, (NUM_CLASSES,), dtype=jnp.float32) * 0.1

    out = ensemble_forward(x, w_sub, b_sub, w_cls, b_cls)
    out = jax.block_until_ready(out)

    ref = _reference(x, w_sub, b_sub, w_cls, b_cls)
    assert out.shape == (B, NUM_CLASSES)
    assert jnp.allclose(out, ref, atol=1e-4, rtol=1e-4), (out, ref)

    print("KERNEL_OK")
</pallas_src>

<mosaic_0001>
module attributes {stable_mosaic.version = 11 : i64} {
  func.func @_ensemble_kernel(%arg0: i32, %arg1: memref<8x4x256xf32, #tpu.memory_space<vmem>>, %arg2: memref<4x128xf32, #tpu.memory_space<vmem>>, %arg3: memref<1x128xf32, #tpu.memory_space<vmem>>, %arg4: memref<8x128xf32, #tpu.memory_space<vmem>>) attributes {dimension_semantics = [#tpu.dimension_semantics<parallel>], iteration_bounds = array<i64: 1>, scalar_prefetch = 0 : i64, scratch_operands = 0 : i64, tpu.core_type = #tpu.core_type<tc>, window_params = [{transform_indices = @transform_0, window_bounds = array<i64: 8, 4, 256>}, {pipeline_mode = #tpu.pipeline_mode<synchronous>, transform_indices = @transform_1, window_bounds = array<i64: 4, 128>}, {pipeline_mode = #tpu.pipeline_mode<synchronous>, transform_indices = @transform_2, window_bounds = array<i64: 1, 128>}, {transform_indices = @transform_3, window_bounds = array<i64: 8, 128>}]} {
    %c0 = arith.constant 0 : index
    %c0_0 = arith.constant 0 : index
    %c0_1 = arith.constant 0 : index
    %0 = vector.load %arg1[%c0, %c0_0, %c0_1] : memref<8x4x256xf32, #tpu.memory_space<vmem>>, vector<8x4x256xf32>
    %cst = arith.constant dense<0.000000e+00> : vector<8x4xf32>
    %1 = vector.multi_reduction <add>, %0, %cst [2] : vector<8x4x256xf32> to vector<8x4xf32>
    %c0_2 = arith.constant 0 : index
    %c0_3 = arith.constant 0 : index
    %2 = vector.load %arg2[%c0_2, %c0_3] : memref<4x128xf32, #tpu.memory_space<vmem>>, vector<4x128xf32>
    %cst_4 = arith.constant dense<0.000000e+00> : vector<8x128xf32>
    %3 = tpu.matmul %1, %2, %cst_4 {dimension_numbers = #tpu.dot_dimension_numbers<[1], [0], [0], [1], [0, 0, 1, 1], [], []>} : vector<8x4xf32>, vector<4x128xf32>, vector<8x128xf32> -> vector<8x128xf32>
    %c0_5 = arith.constant 0 : index
    %c0_6 = arith.constant 0 : index
    %4 = vector.load %arg3[%c0_5, %c0_6] : memref<1x128xf32, #tpu.memory_space<vmem>>, vector<1x128xf32>
    %5 = vector.broadcast %4 : vector<1x128xf32> to vector<8x128xf32>
    %6 = arith.addf %3, %5 : vector<8x128xf32>
    %c0_7 = arith.constant 0 : index
    %c0_8 = arith.constant 0 : index
    %7 = vector.load %arg4[%c0_7, %c0_8] : memref<8x128xf32, #tpu.memory_space<vmem>>, vector<8x128xf32>
    tpu.vector_store %arg4[%c0_7, %c0_8], %6 {strides = array<i32>} : memref<8x128xf32, #tpu.memory_space<vmem>>, vector<8x128xf32>,
    return
  }
  func.func @transform_0(%arg0: i32) -> (i32, i32, i32) {
    %c0_i32 = arith.constant 0 : i32
    %c0_i32_0 = arith.constant 0 : i32
    %c0_i32_1 = arith.constant 0 : i32
    return %arg0, %c0_i32, %c0_i32_0 : i32, i32, i32
  }
  func.func @transform_1(%arg0: i32) -> (i32, i32) {
    %c0_i32 = arith.constant 0 : i32
    %c0_i32_0 = arith.constant 0 : i32
    %c0_i32_1 = arith.constant 0 : i32
    return %c0_i32, %c0_i32_0 : i32, i32
  }
  func.func @transform_2(%arg0: i32) -> (i32, i32) {
    %c0_i32 = arith.constant 0 : i32
    %c0_i32_0 = arith.constant 0 : i32
    %c0_i32_1 = arith.constant 0 : i32
    return %c0_i32, %c0_i32_0 : i32, i32
  }
  func.func @transform_3(%arg0: i32) -> (i32, i32) {
    %c0_i32 = arith.constant 0 : i32
    %c0_i32_0 = arith.constant 0 : i32
    return %arg0, %c0_i32 : i32, i32
  }
}

</mosaic_0001>

<bundles_post_ra>
// kernel: tpu_custom_call.1
= control target key start
LH: loop header
LB: loop body
LE: loop exit
PB: predicated region body
PF: predicated region fallthrough
CT: control target
= control target key end

     0   :  { %8 = vsyncpa [#allocation3], 0  ;;  %s451_s0 = inlined_call_operand.hbm [shape: f32[8,4,256], index: 0, kind: input, shape index: {}]   ;;  %s452_s1 = inlined_call_operand.hbm [shape: f32[4,128], index: 1, kind: input, shape index: {}]   ;;  %s453_s2 = inlined_call_operand.vmem [shape: f32[1,128], index: 2, kind: input, shape index: {}]   ;;  %s454_s3 = inlined_call_operand.hbm [shape: f32[8,128], index: 3, kind: output, shape index: {}]  }
   0x1   :  { %9 = vsyncpa [#allocation6], 0 }
   0x2   :  { %10 = vsyncpa [#allocation4], 0  ;;  %s368_s12 = smov [#allocation2]   ;;  %s296_s16 = scalar_lea.hbm %s451_s0, 1024 }
   0x3   :  { %s16_s13 = sshll.u32 %s368_s12, 4  ;;  %p297_p0 = scmp.ne.s32.totalorder %s451_s0, %s296_s16  ;;  %s17_s13 = int_to_ptr.vmem [resolvable:$true] %s16_s13 }
   0x4   :  { %p300_p1 = scmp.lt.u32.totalorder %s296_s16, %s451_s0 }
   0x6   :  { %p302_p2 = pnand %p300_p1, %p297_p0 }
   0x8   :  { %305 = shalt.err (!%p302_p2)
}
   0x9   :  { %s306_s21 = scalar_lea.vmem %s17_s13, 1024  ;;  %p311_p4 = scmp.lt.s32.totalorder %s17_s13, %s17_s13 }
   0xa   :  { %p307_p3 = scmp.ne.s32.totalorder %s17_s13, %s306_s21  ;;  %p312_p5 = scmp.lt.s32.totalorder %s306_s21, %s306_s21 }
   0xc   :  { %p313_p6 = por %p312_p5, %p311_p4 }
   0xe   :  { %p314_p7 = pnand %p313_p6, %p307_p3 }
  0x10   :  { %317 = shalt.err (!%p314_p7)
}
  0x11   :  { %s369_s22 = smov 128   ;;  %s370_s23 = smov 8  }
  0x12   :  { %22 = dma.hbm_to_vmem [thread:$0]  %s451_s0, 1024, %s17_s13, [#allocation3], %s369_s22, %s369_s22, %s370_s23  }
  0x13   :  { %s371_s26 = smov [#allocation5]   ;;  %s318_s30 = scalar_lea.hbm %s452_s1, 64 }
  0x14   :  { %s29_s27 = sshll.u32 %s371_s26, 4  ;;  %p319_p8 = scmp.ne.s32.totalorder %s452_s1, %s318_s30  ;;  %s30_s27 = int_to_ptr.vmem [resolvable:$true] %s29_s27 }
  0x15   :  { %p322_p9 = scmp.lt.u32.totalorder %s318_s30, %s452_s1 }
  0x17   :  { %p324_p10 = pnand %p322_p9, %p319_p8 }
  0x19   :  { %327 = shalt.err (!%p324_p10)
}
  0x1a   :  { %s328_s8 = scalar_lea.vmem %s30_s27, 64  ;;  %p333_p12 = scmp.lt.s32.totalorder %s30_s27, %s30_s27 }
  0x1b   :  { %p329_p11 = scmp.ne.s32.totalorder %s30_s27, %s328_s8  ;;  %p334_p13 = scmp.lt.s32.totalorder %s328_s8, %s328_s8 }
  0x1d   :  { %p335_p0 = por %p334_p13, %p333_p12 }
  0x1f   :  { %p336_p1 = pnand %p335_p0, %p329_p11 }
  0x21   :  { %339 = shalt.err (!%p336_p1)
}
  0x22   :  { %32 = dma.hbm_to_vmem [thread:$0]  %s452_s1, 64, %s30_s27, [#allocation6]  }
  0x23   :  { %362 = dma.done.wait [#allocation3], 1024  }
  0x24   :  { %363 = vsyncadd [#allocation3], 4294966272 }
  0x25   :  { %364 = dma.done.wait [#allocation6], 64  }
  0x26   :  { %365 = vsyncadd [#allocation6], 4294967232  ;;  %vm73_vm0 = vcmask 1043456   ;;  %v41_v0 = vld [vmem:[#allocation2] sm:$0xff]  ;;  %v43_v1 = vld [vmem:[#allocation2 + $0x10] sm:$0xff]  ;;  %v372_v40 = vmov 0.0   ;;  %v130_v42 = vlaneseq }
  0x27   :  { %v42_v2 = vld [vmem:[#allocation2 + $0x8] sm:$0xff]  ;;  %v57_v3 = vcombine.high %v41_v0, %v41_v0  ;;  %v74_v4 = vsel %vm73_vm0, %v41_v0, 0.0  ;;  %v59_v5 = vcombine.high %v43_v1, %v43_v1  ;;  %v84_v6 = vsel %vm73_vm0, %v43_v1, 0.0  ;;  %v44_v7 = vld [vmem:[#allocation2 + $0x18] sm:$0xff]  ;;  %v45_v8 = vld [vmem:[#allocation2 + $0x20] sm:$0xff]  ;;  %276 = vmatprep.subr.mxu0 %v372_v40  ;;  %s374_s11 = smov [#allocation7]  }
  0x28   :  { %v58_v9 = vcombine.high %v42_v2, %v42_v2  ;;  %v79_v10 = vsel %vm73_vm0, %v42_v2, 0.0  ;;  %v60_v11 = vcombine.high %v44_v7, %v44_v7  ;;  %v46_v12 = vld [vmem:[#allocation2 + $0x28] sm:$0xff]  ;;  %v89_v15 = vsel %vm73_vm0, %v44_v7, 0.0  ;;  %v47_v21 = vld [vmem:[#allocation2 + $0x30] sm:$0xff]  ;;  %v48_v22 = vld [vmem:[#allocation2 + $0x38] sm:$0xff]  ;;  %s261_s12 = sshll.u32 %s374_s11, 4  ;;  %s262_s12 = int_to_ptr.vmem [resolvable:$true] %s261_s12 }
  0x29   :  { %v75_v13 = vsel %vm73_vm0, %v57_v3, 0.0  ;;  %v85_v14 = vsel %vm73_vm0, %v59_v5, 0.0  ;;  %v61_v16 = vcombine.high %v45_v8, %v45_v8  ;;  %v62_v23 = vcombine.high %v46_v12, %v46_v12  ;;  %v114_v41 = vld [vmem:[#allocation5] sm:$0xf]  ;;  %s340_s13 = scalar_lea.vmem %s262_s12, 128  ;;  %p345_p3 = scmp.lt.s32.totalorder %s262_s12, %s262_s12 }
  0x2a   :  { %v76_v17 = vadd.f32 %v75_v13, %v74_v4  ;;  %v86_v18 = vadd.f32 %v85_v14, %v84_v6  ;;  %v80_v19 = vsel %vm73_vm0, %v58_v9, 0.0  ;;  %v90_v20 = vsel %vm73_vm0, %v60_v11, 0.0  ;;  %277 = vmatpush3.msk.msra.mxu0 %vm73_vm0, %v114_v41  ;;  %v271_v5 = vld [vmem:[%s453_s2] ss:$0 sm:$0xff]  ;;  %p341_p2 = scmp.ne.s32.totalorder %s262_s12, %s340_s13  ;;  %p346_p4 = scmp.lt.s32.totalorder %s340_s13, %s340_s13 }
  0x2b   :  { %v81_v24 = vadd.f32 %v80_v19, %v79_v10  ;;  %v91_v25 = vadd.f32 %v90_v20, %v89_v15  ;;  %v94_v26 = vsel %vm73_vm0, %v45_v8, 0.0  ;;  %v95_v27 = vsel %vm73_vm0, %v61_v16, 0.0 }
  0x2c   :  { %77 = vadd.xlane.f32.xlu0 %v76_v17  ;;  %87 = vadd.xlane.f32.xlu1 %v86_v18  ;;  %v99_v28 = vsel %vm73_vm0, %v46_v12, 0.0  ;;  %v100_v29 = vsel %vm73_vm0, %v62_v23, 0.0  ;;  %v63_v30 = vcombine.high %v47_v21, %v47_v21  ;;  %v64_v31 = vcombine.high %v48_v22, %v48_v22  ;;  %p347_p5 = por %p346_p4, %p345_p3 }
  0x2d   :  { %v96_v32 = vadd.f32 %v95_v27, %v94_v26  ;;  %v101_v33 = vadd.f32 %v100_v29, %v99_v28  ;;  %v104_v34 = vsel %vm73_vm0, %v47_v21, 0.0  ;;  %v109_v36 = vsel %vm73_vm0, %v48_v22, 0.0 }
  0x2e   :  { %v105_v35 = vsel %vm73_vm0, %v63_v30, 0.0  ;;  %v110_v37 = vsel %vm73_vm0, %v64_v31, 0.0  ;;  %vm373_vm1 = vmmov 0   ;;  %v131_v43 = vand.u32 127, %v130_v42  ;;  %p348_p6 = pnand %p347_p5, %p341_p2 }
  0x2f   :  { %v106_v38 = vadd.f32 %v105_v35, %v104_v34  ;;  %v111_v39 = vadd.f32 %v110_v37, %v109_v36  ;;  %278 = vmatprep.mubr.msk.f32.mxu0 %vm373_vm1, %v372_v40  ;;  %v133_v44 = vshrl.u32 %v130_v42, 7  ;;  %vm164_vm2 = vcmask 1041409  }
  0x30   :  { %82 = vadd.xlane.f32.xlu0 %v81_v24  ;;  %92 = vadd.xlane.f32.xlu1 %v91_v25  ;;  %vm166_vm3 = vcmask 1042434   ;;  %vm168_vm4 = vcmask 1043459   ;;  %vm170_vm5 = vcmask 1044484   ;;  %vm172_vm6 = vcmask 1045509  }
  0x31   :  { %v134_v47 = vsub.s32 %v131_v43, %v133_v44  ;;  %vm174_vm7 = vcmask 1046534   ;;  %vm176_vm8 = vcmask 1047559   ;;  %vm178_vm9 = vcmask 31744  }
  0x34   :  { %97 = vadd.xlane.f32.xlu0 %v96_v32  ;;  %102 = vadd.xlane.f32.xlu1 %v101_v33 }
  0x38   :  { %107 = vadd.xlane.f32.xlu0 %v106_v38  ;;  %112 = vadd.xlane.f32.xlu1 %v111_v39 }
  0xb9   :  { %v78_v45 = vpop.xlane.xlu0 %77  ;;  %v88_v46 = vpop.xlane.xlu1 %87 }
  0xba   :  { %v135_v50 = vrot.slane %v78_v45, %v134_v47  ;;  %v143_v53 = vrot.slane %v88_v46, %v134_v47 }
  0xbd   :  { %v83_v48 = vpop.xlane.xlu0 %82  ;;  %v93_v49 = vpop.xlane.xlu1 %92 }
  0xbe   :  { %v139_v51 = vrot.slane %v83_v48, %v134_v47  ;;  %v147_v52 = vrot.slane %v93_v49, %v134_v47 }
  0xc0   :  { %v165_v54 = vsel %vm164_vm2, %v139_v51, %v135_v50 }
  0xc1   :  { %v167_v55 = vsel %vm166_vm3, %v143_v53, %v165_v54  ;;  %v98_v56 = vpop.xlane.xlu0 %97  ;;  %v103_v57 = vpop.xlane.xlu1 %102 }
  0xc2   :  { %v169_v58 = vsel %vm168_vm4, %v147_v52, %v167_v55  ;;  %v151_v59 = vrot.slane %v98_v56, %v134_v47  ;;  %v155_v60 = vrot.slane %v103_v57, %v134_v47 }
  0xc4   :  { %v171_v61 = vsel %vm170_vm5, %v151_v59, %v169_v58 }
  0xc5   :  { %v108_v62 = vpop.xlane.xlu0 %107  ;;  %v113_v63 = vpop.xlane.xlu1 %112  ;;  %v173_v2 = vsel %vm172_vm6, %v155_v60, %v171_v61 }
  0xc6   :  { %v159_v0 = vrot.slane %v108_v62, %v134_v47  ;;  %v163_v1 = vrot.slane %v113_v63, %v134_v47 }
  0xc8   :  { %v175_v3 = vsel %vm174_vm7, %v159_v0, %v173_v2 }
  0xc9   :  { %v177_v4 = vsel %vm176_vm8, %v163_v1, %v175_v3 }
  0xca   :  { %279 = vmatmul.mubr.msk.f32.vlgmr.msra.gmra.mrb[0].mxu0 %vm178_vm9, %v177_v4 }
 0x19d   :  { %v250_v6 = vpop.f32.mrb[0].mxu0 }
 0x19e   :  { %v251_v7 = vadd.f32 %v271_v5, %v250_v6  ;;  %v280_v8 = vpop.f32.mrb[1].mxu0 }
 0x1a0   :  { %254 = vst [vmem:[#allocation7] sm:$0xff] %v251_v7 }
 0x1a1   :  { %351 = shalt.err (!%p348_p6)
}
 0x1a2   :  { %s352_s16 = scalar_lea.hbm %s454_s3, 128 }
 0x1a3   :  { %p353_p7 = scmp.ne.s32.totalorder %s454_s3, %s352_s16  ;;  %p356_p8 = scmp.lt.u32.totalorder %s352_s16, %s454_s3 }
 0x1a5   :  { %p358_p9 = pnand %p356_p8, %p353_p7 }
 0x1a7   :  { %361 = shalt.err (!%p358_p9)
}
 0x1a8   :  { %264 = dma.vmem_to_hbm [thread:$0]  %s262_s12, 128, %s454_s3, [#allocation4]  }
 0x1a9   :  { %366 = dma.done.wait [#allocation4], 128  }
 0x1aa   :  { %367 = vsyncadd [#allocation4], 4294967168 }
 0x1ab   :  { %268 = vsyncpa [#allocation3], 1 }
 0x1ac   :  { %269 = vsyncpa [#allocation6], 1 }
 0x1ad   :  { %270 = vsyncpa [#allocation4], 1 }

</bundles_post_ra>
